<compile_context>
chip_gen: v7x
topology: tpu7x:2x2x1
jax: 0.10.0
libtpu: 0.0.40
codegen_flags: <defaults>
</compile_context>

<pallas_src>
import functools

import jax
import jax.numpy as jnp
from jax.experimental import pallas as pl
from jax.experimental.pallas import tpu as pltpu


def _round_up(x, m):
    return (x + m - 1) // m * m


# ----------------------------------------------------------------------------
# Pallas kernel: fused conv (k*k shifted matmuls) + folded-BN bias + SiLU
# ----------------------------------------------------------------------------
def _conv_bn_silu_kernel(x_ref, w_ref, b_ref, o_ref, *, k, d, Wp, L_out):
    # x_ref: (C1p, L_in)      one image; channels on sublanes; flattened padded
    #                         spatial plane (row-major, stride Wp) on lanes.
    # w_ref: (k*k, C2p, C1p)  per-tap weight matrices (BN scale pre-folded).
    # b_ref: (C2p, 1)         folded BN bias.
    # o_ref: (C2p, L_out)     output in the same row-major Wp-strided layout.
    acc = None
    for t in range(k * k):                           # fully unrolled tap loop
        i, j = t // k, t % k
        delta = d * (i * Wp + j)                     # static flat shift of tap
        xs = x_ref[:, pl.ds(delta, L_out)]           # (C1p, L_out) shifted tap
        part = jax.lax.dot_general(                  # (C2p,C1p) @ (C1p,L_out)
            w_ref[t], xs,
            dimension_numbers=(((1,), (0,)), ((), ())),
            preferred_element_type=jnp.float32)
        acc = part if acc is None else acc + part
    y = acc + b_ref[...]                             # bias add (scale in weights)
    sig = pl.reciprocal(1.0 + jnp.exp(-y), approx=True)   # EUP exp + EUP recip
    o_ref[...] = (y * sig).astype(o_ref.dtype)       # SiLU, lane-dense store


# ----------------------------------------------------------------------------
# Wrapper: padding / flattening, BN folding, NCHW plumbing
# ----------------------------------------------------------------------------
@functools.partial(jax.jit, static_argnames=("k", "p", "s", "d"))
def conv2d_block(x_nchw, weight, gamma, beta, run_mean, run_var,
                 *, k, p, s, d, eps=1e-5):
    """Forward of Conv2d(c1, c2, k, p, s, d, g=1, act='silu', norm='BN'(eval))."""
    N, C1, H, W = x_nchw.shape
    C2 = weight.shape[0]

    Hp, Wp = H + 2 * p, W + 2 * p
    OH1 = Hp - d * (k - 1)                    # stride-1 output extents
    OW1 = Wp - d * (k - 1)

    C1p = _round_up(C1, 8)                    # sublane-friendly channel pads
    C2p = _round_up(C2, 8)
    delta_max = d * (k - 1) * (Wp + 1)        # largest in-kernel tap shift
    L_out = _round_up(OH1 * Wp, 128)          # lane-dense output width
    L_in = _round_up(L_out + delta_max, 128)  # input plane + room for max shift

    # Single padded copy of the input (vs. the k*k im2col blow-up): pad channels
    # to a sublane multiple, pad spatially, flatten the spatial plane row-major.
    xp = jnp.pad(x_nchw, ((0, 0), (0, C1p - C1), (p, p), (p, p)))
    x_flat = xp.reshape(N, C1p, Hp * Wp)
    x_flat = jnp.pad(x_flat, ((0, 0), (0, 0), (0, L_in - Hp * Wp)))

    # Fold eval-mode BatchNorm scale into the conv weight; keep only the bias.
    scale = gamma / jnp.sqrt(run_var + eps)                  # (C2,)
    bias = beta - run_mean * scale                           # (C2,)
    w_scaled = weight * scale[:, None, None, None]           # (C2, C1, k, k)
    w_taps = jnp.transpose(w_scaled, (2, 3, 0, 1)).reshape(k * k, C2, C1)
    w_taps = jnp.pad(w_taps, ((0, 0), (0, C2p - C2), (0, C1p - C1)))
    bias_p = jnp.pad(bias, (0, C2p - C2)).reshape(C2p, 1)

    kernel = functools.partial(_conv_bn_silu_kernel, k=k, d=d, Wp=Wp, L_out=L_out)
    out_flat = pl.pallas_call(
        kernel,
        out_shape=jax.ShapeDtypeStruct((N, C2p, L_out), jnp.float32),
        grid_spec=pltpu.PrefetchScalarGridSpec(
            num_scalar_prefetch=0,
            grid=(N,),
            in_specs=[
                pl.BlockSpec((pl.Squeezed(), C1p, L_in), lambda n: (n, 0, 0)),
                pl.BlockSpec((k * k, C2p, C1p), lambda n: (0, 0, 0)),
                pl.BlockSpec((C2p, 1), lambda n: (0, 0)),
            ],
            out_specs=pl.BlockSpec((pl.Squeezed(), C2p, L_out),
                                   lambda n: (n, 0, 0)),
        ),
        compiler_params=pltpu.CompilerParams(
            dimension_semantics=("parallel",)),
    )(x_flat, w_taps, bias_p)

    # Output is already channel-major (NCHW-compatible): drop padded channels,
    # the Wp-stride junk columns, and apply stride by subsampling.
    out = out_flat[:, :C2, :OH1 * Wp].reshape(N, C2, OH1, Wp)[:, :, :, :OW1]
    if s > 1:
        out = out[:, :, ::s, ::s]
    return out


# ----------------------------------------------------------------------------
# Pure-JAX reference (for correctness check)
# ----------------------------------------------------------------------------
def _reference(x, weight, gamma, beta, run_mean, run_var, *, k, p, s, d, eps=1e-5):
    y = jax.lax.conv_general_dilated(
        x, weight, window_strides=(s, s), padding=[(p, p), (p, p)],
        rhs_dilation=(d, d),
        dimension_numbers=("NCHW", "OIHW", "NCHW"))
    scale = (gamma / jnp.sqrt(run_var + eps)).reshape(1, -1, 1, 1)
    bias = (beta - run_mean * gamma / jnp.sqrt(run_var + eps)).reshape(1, -1, 1, 1)
    y = y * scale + bias
    return y * jax.nn.sigmoid(y)


if __name__ == "__main__":
    key = jax.random.PRNGKey(0)
    k_x, k_w, k_g, k_b, k_m, k_v = jax.random.split(key, 6)

    # Small shapes: batch=2, c1=4, c2=8, spatial=16x16, 3x3 conv, pad=1, stride=1.
    N, C1, C2, H, W = 2, 4, 8, 16, 16
    K, P, S, D = 3, 1, 1, 1

    x = jax.random.normal(k_x, (N, C1, H, W), dtype=jnp.float32)
    weight = jax.random.normal(k_w, (C2, C1, K, K), dtype=jnp.float32) * 0.1
    gamma = jax.random.normal(k_g, (C2,), dtype=jnp.float32) * 0.1 + 1.0
    beta = jax.random.normal(k_b, (C2,), dtype=jnp.float32) * 0.1
    run_mean = jax.random.normal(k_m, (C2,), dtype=jnp.float32) * 0.1
    run_var = jax.random.uniform(k_v, (C2,), dtype=jnp.float32,
                                 minval=0.5, maxval=1.5)

    out = conv2d_block(x, weight, gamma, beta, run_mean, run_var,
                       k=K, p=P, s=S, d=D)
    out = jax.block_until_ready(out)

    ref = _reference(x, weight, gamma, beta, run_mean, run_var,
                     k=K, p=P, s=S, d=D)
    assert out.shape == (N, C2, H, W), out.shape
    # Tolerance is relaxed slightly because SiLU uses the approximate EUP
    # reciprocal (pl.reciprocal(..., approx=True)); a real bug would give O(1)
    # errors, far above this bound.
    assert jnp.allclose(out, ref, atol=1e-2, rtol=1e-2), "mismatch vs reference"

    print("KERNEL_OK")
</pallas_src>

<mosaic_0001>
module attributes {stable_mosaic.version = 11 : i64} {
  func.func @_conv_bn_silu_kernel(%arg0: i32, %arg1: memref<1x8x512xf32, #tpu.memory_space<vmem>>, %arg2: memref<9x8x8xf32, #tpu.memory_space<vmem>>, %arg3: memref<8x1xf32, #tpu.memory_space<vmem>>, %arg4: memref<1x8x384xf32, #tpu.memory_space<vmem>>) attributes {dimension_semantics = [#tpu.dimension_semantics<parallel>], iteration_bounds = array<i64: 2>, scalar_prefetch = 0 : i64, scratch_operands = 0 : i64, tpu.core_type = #tpu.core_type<tc>, window_params = [{transform_indices = @transform_0, window_bounds = array<i64: 1, 8, 512>}, {pipeline_mode = #tpu.pipeline_mode<synchronous>, transform_indices = @transform_1, window_bounds = array<i64: 9, 8, 8>}, {pipeline_mode = #tpu.pipeline_mode<synchronous>, transform_indices = @transform_2, window_bounds = array<i64: 8, 1>}, {transform_indices = @transform_3, window_bounds = array<i64: 1, 8, 384>}]} {
    %c0 = arith.constant 0 : index
    %c0_0 = arith.constant 0 : index
    %c0_1 = arith.constant 0 : index
    %0 = vector.load %arg1[%c0, %c0_0, %c0_1] : memref<1x8x512xf32, #tpu.memory_space<vmem>>, vector<1x8x384xf32>
    %1 = vector.shape_cast %0 : vector<1x8x384xf32> to vector<8x384xf32>
    %c0_2 = arith.constant 0 : index
    %c0_3 = arith.constant 0 : index
    %c0_4 = arith.constant 0 : index
    %2 = vector.load %arg2[%c0_2, %c0_3, %c0_4] : memref<9x8x8xf32, #tpu.memory_space<vmem>>, vector<1x8x8xf32>
    %3 = vector.shape_cast %2 : vector<1x8x8xf32> to vector<8x8xf32>
    %cst = arith.constant dense<0.000000e+00> : vector<8x384xf32>
    %4 = tpu.matmul %3, %1, %cst {dimension_numbers = #tpu.dot_dimension_numbers<[1], [0], [0], [1], [0, 0, 1, 1], [], []>} : vector<8x8xf32>, vector<8x384xf32>, vector<8x384xf32> -> vector<8x384xf32>
    %c0_5 = arith.constant 0 : index
    %c0_6 = arith.constant 0 : index
    %c1 = arith.constant 1 : index
    %5 = vector.load %arg1[%c0_5, %c0_6, %c1] : memref<1x8x512xf32, #tpu.memory_space<vmem>>, vector<1x8x384xf32>
    %6 = vector.shape_cast %5 : vector<1x8x384xf32> to vector<8x384xf32>
    %c1_7 = arith.constant 1 : index
    %c0_8 = arith.constant 0 : index
    %c0_9 = arith.constant 0 : index
    %7 = vector.load %arg2[%c1_7, %c0_8, %c0_9] : memref<9x8x8xf32, #tpu.memory_space<vmem>>, vector<1x8x8xf32>
    %8 = vector.shape_cast %7 : vector<1x8x8xf32> to vector<8x8xf32>
    %cst_10 = arith.constant dense<0.000000e+00> : vector<8x384xf32>
    %9 = tpu.matmul %8, %6, %cst_10 {dimension_numbers = #tpu.dot_dimension_numbers<[1], [0], [0], [1], [0, 0, 1, 1], [], []>} : vector<8x8xf32>, vector<8x384xf32>, vector<8x384xf32> -> vector<8x384xf32>
    %10 = arith.addf %4, %9 : vector<8x384xf32>
    %c0_11 = arith.constant 0 : index
    %c0_12 = arith.constant 0 : index
    %c2 = arith.constant 2 : index
    %11 = vector.load %arg1[%c0_11, %c0_12, %c2] : memref<1x8x512xf32, #tpu.memory_space<vmem>>, vector<1x8x384xf32>
    %12 = vector.shape_cast %11 : vector<1x8x384xf32> to vector<8x384xf32>
    %c2_13 = arith.constant 2 : index
    %c0_14 = arith.constant 0 : index
    %c0_15 = arith.constant 0 : index
    %13 = vector.load %arg2[%c2_13, %c0_14, %c0_15] : memref<9x8x8xf32, #tpu.memory_space<vmem>>, vector<1x8x8xf32>
    %14 = vector.shape_cast %13 : vector<1x8x8xf32> to vector<8x8xf32>
    %cst_16 = arith.constant dense<0.000000e+00> : vector<8x384xf32>
    %15 = tpu.matmul %14, %12, %cst_16 {dimension_numbers = #tpu.dot_dimension_numbers<[1], [0], [0], [1], [0, 0, 1, 1], [], []>} : vector<8x8xf32>, vector<8x384xf32>, vector<8x384xf32> -> vector<8x384xf32>
    %16 = arith.addf %10, %15 : vector<8x384xf32>
    %c0_17 = arith.constant 0 : index
    %c0_18 = arith.constant 0 : index
    %c18 = arith.constant 18 : index
    %17 = vector.load %arg1[%c0_17, %c0_18, %c18] : memref<1x8x512xf32, #tpu.memory_space<vmem>>, vector<1x8x384xf32>
    %18 = vector.shape_cast %17 : vector<1x8x384xf32> to vector<8x384xf32>
    %c3 = arith.constant 3 : index
    %c0_19 = arith.constant 0 : index
    %c0_20 = arith.constant 0 : index
    %19 = vector.load %arg2[%c3, %c0_19, %c0_20] : memref<9x8x8xf32, #tpu.memory_space<vmem>>, vector<1x8x8xf32>
    %20 = vector.shape_cast %19 : vector<1x8x8xf32> to vector<8x8xf32>
    %cst_21 = arith.constant dense<0.000000e+00> : vector<8x384xf32>
    %21 = tpu.matmul %20, %18, %cst_21 {dimension_numbers = #tpu.dot_dimension_numbers<[1], [0], [0], [1], [0, 0, 1, 1], [], []>} : vector<8x8xf32>, vector<8x384xf32>, vector<8x384xf32> -> vector<8x384xf32>
    %22 = arith.addf %16, %21 : vector<8x384xf32>
    %c0_22 = arith.constant 0 : index
    %c0_23 = arith.constant 0 : index
    %c19 = arith.constant 19 : index
    %23 = vector.load %arg1[%c0_22, %c0_23, %c19] : memref<1x8x512xf32, #tpu.memory_space<vmem>>, vector<1x8x384xf32>
    %24 = vector.shape_cast %23 : vector<1x8x384xf32> to vector<8x384xf32>
    %c4 = arith.constant 4 : index
    %c0_24 = arith.constant 0 : index
    %c0_25 = arith.constant 0 : index
    %25 = vector.load %arg2[%c4, %c0_24, %c0_25] : memref<9x8x8xf32, #tpu.memory_space<vmem>>, vector<1x8x8xf32>
    %26 = vector.shape_cast %25 : vector<1x8x8xf32> to vector<8x8xf32>
    %cst_26 = arith.constant dense<0.000000e+00> : vector<8x384xf32>
    %27 = tpu.matmul %26, %24, %cst_26 {dimension_numbers = #tpu.dot_dimension_numbers<[1], [0], [0], [1], [0, 0, 1, 1], [], []>} : vector<8x8xf32>, vector<8x384xf32>, vector<8x384xf32> -> vector<8x384xf32>
    %28 = arith.addf %22, %27 : vector<8x384xf32>
    %c0_27 = arith.constant 0 : index
    %c0_28 = arith.constant 0 : index
    %c20 = arith.constant 20 : index
    %29 = vector.load %arg1[%c0_27, %c0_28, %c20] : memref<1x8x512xf32, #tpu.memory_space<vmem>>, vector<1x8x384xf32>
    %30 = vector.shape_cast %29 : vector<1x8x384xf32> to vector<8x384xf32>
    %c5 = arith.constant 5 : index
    %c0_29 = arith.constant 0 : index
    %c0_30 = arith.constant 0 : index
    %31 = vector.load %arg2[%c5, %c0_29, %c0_30] : memref<9x8x8xf32, #tpu.memory_space<vmem>>, vector<1x8x8xf32>
    %32 = vector.shape_cast %31 : vector<1x8x8xf32> to vector<8x8xf32>
    %cst_31 = arith.constant dense<0.000000e+00> : vector<8x384xf32>
    %33 = tpu.matmul %32, %30, %cst_31 {dimension_numbers = #tpu.dot_dimension_numbers<[1], [0], [0], [1], [0, 0, 1, 1], [], []>} : vector<8x8xf32>, vector<8x384xf32>, vector<8x384xf32> -> vector<8x384xf32>
    %34 = arith.addf %28, %33 : vector<8x384xf32>
    %c0_32 = arith.constant 0 : index
    %c0_33 = arith.constant 0 : index
    %c36 = arith.constant 36 : index
    %35 = vector.load %arg1[%c0_32, %c0_33, %c36] : memref<1x8x512xf32, #tpu.memory_space<vmem>>, vector<1x8x384xf32>
    %36 = vector.shape_cast %35 : vector<1x8x384xf32> to vector<8x384xf32>
    %c6 = arith.constant 6 : index
    %c0_34 = arith.constant 0 : index
    %c0_35 = arith.constant 0 : index
    %37 = vector.load %arg2[%c6, %c0_34, %c0_35] : memref<9x8x8xf32, #tpu.memory_space<vmem>>, vector<1x8x8xf32>
    %38 = vector.shape_cast %37 : vector<1x8x8xf32> to vector<8x8xf32>
    %cst_36 = arith.constant dense<0.000000e+00> : vector<8x384xf32>
    %39 = tpu.matmul %38, %36, %cst_36 {dimension_numbers = #tpu.dot_dimension_numbers<[1], [0], [0], [1], [0, 0, 1, 1], [], []>} : vector<8x8xf32>, vector<8x384xf32>, vector<8x384xf32> -> vector<8x384xf32>
    %40 = arith.addf %34, %39 : vector<8x384xf32>
    %c0_37 = arith.constant 0 : index
    %c0_38 = arith.constant 0 : index
    %c37 = arith.constant 37 : index
    %41 = vector.load %arg1[%c0_37, %c0_38, %c37] : memref<1x8x512xf32, #tpu.memory_space<vmem>>, vector<1x8x384xf32>
    %42 = vector.shape_cast %41 : vector<1x8x384xf32> to vector<8x384xf32>
    %c7 = arith.constant 7 : index
    %c0_39 = arith.constant 0 : index
    %c0_40 = arith.constant 0 : index
    %43 = vector.load %arg2[%c7, %c0_39, %c0_40] : memref<9x8x8xf32, #tpu.memory_space<vmem>>, vector<1x8x8xf32>
    %44 = vector.shape_cast %43 : vector<1x8x8xf32> to vector<8x8xf32>
    %cst_41 = arith.constant dense<0.000000e+00> : vector<8x384xf32>
    %45 = tpu.matmul %44, %42, %cst_41 {dimension_numbers = #tpu.dot_dimension_numbers<[1], [0], [0], [1], [0, 0, 1, 1], [], []>} : vector<8x8xf32>, vector<8x384xf32>, vector<8x384xf32> -> vector<8x384xf32>
    %46 = arith.addf %40, %45 : vector<8x384xf32>
    %c0_42 = arith.constant 0 : index
    %c0_43 = arith.constant 0 : index
    %c38 = arith.constant 38 : index
    %47 = vector.load %arg1[%c0_42, %c0_43, %c38] : memref<1x8x512xf32, #tpu.memory_space<vmem>>, vector<1x8x384xf32>
    %48 = vector.shape_cast %47 : vector<1x8x384xf32> to vector<8x384xf32>
    %c8 = arith.constant 8 : index
    %c0_44 = arith.constant 0 : index
    %c0_45 = arith.constant 0 : index
    %49 = vector.load %arg2[%c8, %c0_44, %c0_45] : memref<9x8x8xf32, #tpu.memory_space<vmem>>, vector<1x8x8xf32>
    %50 = vector.shape_cast %49 : vector<1x8x8xf32> to vector<8x8xf32>
    %cst_46 = arith.constant dense<0.000000e+00> : vector<8x384xf32>
    %51 = tpu.matmul %50, %48, %cst_46 {dimension_numbers = #tpu.dot_dimension_numbers<[1], [0], [0], [1], [0, 0, 1, 1], [], []>} : vector<8x8xf32>, vector<8x384xf32>, vector<8x384xf32> -> vector<8x384xf32>
    %52 = arith.addf %46, %51 : vector<8x384xf32>
    %c0_47 = arith.constant 0 : index
    %c0_48 = arith.constant 0 : index
    %53 = vector.load %arg3[%c0_47, %c0_48] : memref<8x1xf32, #tpu.memory_space<vmem>>, vector<8x1xf32>
    %54 = vector.broadcast %53 : vector<8x1xf32> to vector<8x384xf32>
    %55 = arith.addf %52, %54 : vector<8x384xf32>
    %cst_49 = arith.constant 0.000000e+00 : f32
    %56 = vector.broadcast %cst_49 : f32 to vector<8x384xf32>
    %57 = arith.subf %56, %55 : vector<8x384xf32>
    %58 = math.exp %57 : vector<8x384xf32>
    %cst_50 = arith.constant 1.000000e+00 : f32
    %59 = vector.broadcast %cst_50 : f32 to vector<8x384xf32>
    %60 = arith.addf %59, %58 : vector<8x384xf32>
    %61 = tpu.reciprocal %60 {approx = true} : vector<8x384xf32> -> vector<8x384xf32>
    %62 = arith.mulf %55, %61 : vector<8x384xf32>
    %c0_51 = arith.constant 0 : index
    %c0_52 = arith.constant 0 : index
    %c0_53 = arith.constant 0 : index
    %63 = vector.load %arg4[%c0_51, %c0_52, %c0_53] : memref<1x8x384xf32, #tpu.memory_space<vmem>>, vector<1x8x384xf32>
    %64 = vector.shape_cast %63 : vector<1x8x384xf32> to vector<8x384xf32>
    %65 = vector.shape_cast %62 : vector<8x384xf32> to vector<1x8x384xf32>
    tpu.vector_store %arg4[%c0_51, %c0_52, %c0_53], %65 {strides = array<i32>} : memref<1x8x384xf32, #tpu.memory_space<vmem>>, vector<1x8x384xf32>,
    return
  }
  func.func @transform_0(%arg0: i32) -> (i32, i32, i32) {
    %c0_i32 = arith.constant 0 : i32
    %c0_i32_0 = arith.constant 0 : i32
    %c0_i32_1 = arith.constant 0 : i32
    return %arg0, %c0_i32, %c0_i32_0 : i32, i32, i32
  }
  func.func @transform_1(%arg0: i32) -> (i32, i32, i32) {
    %c0_i32 = arith.constant 0 : i32
    %c0_i32_0 = arith.constant 0 : i32
    %c0_i32_1 = arith.constant 0 : i32
    %c0_i32_2 = arith.constant 0 : i32
    return %c0_i32, %c0_i32_0, %c0_i32_1 : i32, i32, i32
  }
  func.func @transform_2(%arg0: i32) -> (i32, i32) {
    %c0_i32 = arith.constant 0 : i32
    %c0_i32_0 = arith.constant 0 : i32
    %c0_i32_1 = arith.constant 0 : i32
    return %c0_i32, %c0_i32_0 : i32, i32
  }
  func.func @transform_3(%arg0: i32) -> (i32, i32, i32) {
    %c0_i32 = arith.constant 0 : i32
    %c0_i32_0 = arith.constant 0 : i32
    %c0_i32_1 = arith.constant 0 : i32
    return %arg0, %c0_i32, %c0_i32_0 : i32, i32, i32
  }
}

</mosaic_0001>

<bundles_post_ra>
// kernel: conv2d_block.1
= control target key start
LH: loop header
LB: loop body
LE: loop exit
PB: predicated region body
PF: predicated region fallthrough
CT: control target
= control target key end

     0   :  { %s1910_s12 = smov 0   ;;  %s2066_s0 = inlined_call_operand.vmem [shape: f32[2,8,512], index: 0, kind: input, shape index: {}]   ;;  %s2067_s1 = inlined_call_operand.vmem [shape: f32[9,8,8], index: 1, kind: input, shape index: {}]   ;;  %s2068_s2 = inlined_call_operand.vmem [shape: f32[8,1], index: 2, kind: input, shape index: {}]   ;;  %s2069_s3 = inlined_call_operand.vmem [shape: f32[2,8,384], index: 3, kind: output, shape index: {}]  }
   0x1 LB: > { %s1722_s13 = sadd.s32 4294967295, %s1877_s12   ;;  %p1726_p0 = scmp.ge.s32.totalorder %s1877_s12, 1  ;;  %s1877_s12 = sphi %s1910_s12, %s13_s12  }
   0x2   : > { %p137_p1 = scmp.lt.s32.totalorder %s1877_s12, 3 }
   0x4   : > { %p138_p2 = pnand %p1726_p0, %p137_p1 }
   0x5   : > { %p161_p3 = scmp.lt.s32.totalorder (!%p138_p2), %s1722_s13, 1  ;;  %v1879_v0 = vmov (!%p138_p2), 0.0   ;;  %s1880_s18 = smov (!%p138_p2), 127   ;;  %vm1882_vm0 = vmmov (!%p138_p2), 0   ;;  %v1889_v5 = vmov (!%p138_p2), 0   ;;  %v1637_v6 = vld [vmem:[%s2068_s2] sm:$0xff] (!%p138_p2) }
   0x6   : > { %141 = sbr.rel (%p138_p2) target bundleno = 449 (0x1c1), region = 32  ;;  %268 = vmatprep.mubr.f32.mxu0 (!%p138_p2), %v1879_v0  ;;  %1777 = vmatprep.subr.mxu1 (!%p138_p2), %v1879_v0  ;;  %s1881_s19 = smov (!%p138_p2), 126   ;;  %vm193_vm1 = vcmask (!%p138_p2), 1039360   ;;  %v1730_v12 = vld [vmem:[%s2067_s1 + $0x8] sm:$0xff] (!%p138_p2)  ;;  %vm200_vm2 = vcmask (!%p138_p2), 64512   ;;  %vm499_vm3 = vcmask (!%p138_p2), 1031168  }
   0x7   : > { %1779 = vmatprep.mubr.msk.f32.mxu1 (!%p138_p2), %vm1882_vm0, %v1879_v0  ;;  %s1883_s20 = smov (!%p138_p2), 110   ;;  %s1884_s21 = smov (!%p138_p2), 109   ;;  %1858 = vset.pattern.permute.xlu0 (!%p138_p2), %v1889_v5  ;;  %vm663_vm4 = vcmask (!%p138_p2), 900096   ;;  %v174_v19 = vld [vmem:[%s2067_s1] sm:$0xff] (!%p138_p2)  ;;  %vm827_vm5 = vcmask (!%p138_p2), 891904   ;;  %v1735_v27 = vld [vmem:[%s2067_s1 + $0x10] sm:$0xff] (!%p138_p2) }
   0x8   : > { %s1885_s22 = smov (!%p138_p2), 108   ;;  %s1886_s23 = smov (!%p138_p2), 92   ;;  %vm991_vm6 = vcmask (!%p138_p2), 883712   ;;  %v1738_v35 = vld [vmem:[%s2067_s1 + $0x18] sm:$0xff] (!%p138_p2)  ;;  %v1741_v44 = vld [vmem:[%s2067_s1 + $0x20] sm:$0xff] (!%p138_p2)  ;;  %vm1155_vm7 = vcmask (!%p138_p2), 752640  }
   0x9   : > { %s1887_s24 = smov (!%p138_p2), 91   ;;  %s1888_s25 = smov (!%p138_p2), 90   ;;  %v1744_v51 = vld [vmem:[%s2067_s1 + $0x28] sm:$0xff] (!%p138_p2)  ;;  %v1747_v57 = vld [vmem:[%s2067_s1 + $0x30] sm:$0xff] (!%p138_p2)  ;;  %vm1319_vm8 = vcmask (!%p138_p2), 744448   ;;  %v1750_v61 = vld [vmem:[%s2067_s1 + $0x38] sm:$0xff] (!%p138_p2) }
   0xa   : > { %vm1483_vm9 = vcmask (!%p138_p2), 736256  }
   0xd   : > { %s2071_s13 = smov (!%p161_p3, %s1722_s13), 1 }
   0xe   : > { %s1758_s14 = sshll.u32 %s2071_s13, 5 }
   0xf   : > { %s165_s17 = scalar_lea.vmem %s2066_s0, %s1758_s14 }
  0x10   : > { %v1926_v1 = vld [vmem:[%s165_s17 + $0x8] sm:$0xff]  ;;  %v1928_v2 = vld [vmem:[%s165_s17] sm:$0xff]  ;;  %v1932_v3 = vld [vmem:[%s165_s17 + $0x10] sm:$0xff] }
  0x11   : > { %187 = vrot.lane.b32.xlu0 %v1926_v1, %s1880_s18  ;;  %185 = vrot.lane.b32.xlu1 %v1928_v2, %s1880_s18  ;;  %v178_v4 = vld [vmem:[%s165_s17 + $0x18] sm:$0xff] }
  0x15   : > { %189 = vrot.lane.b32.xlu0 %v1932_v3, %s1880_s18  ;;  %493 = vrot.lane.b32.xlu1 %v1926_v1, %s1881_s19 }
  0x19   : > { %495 = vrot.lane.b32.xlu0 %v1932_v3, %s1881_s19  ;;  %491 = vrot.lane.b32.xlu1 %v1928_v2, %s1881_s19 }
  0x1d   : > { %657 = vrot.lane.b32.xlu0 %v1926_v1, %s1883_s20  ;;  %659 = vrot.lane.b32.xlu1 %v1932_v3, %s1883_s20 }
  0x21   : > { %655 = vrot.lane.b32.xlu0 %v1928_v2, %s1883_s20  ;;  %191 = vrot.lane.b32.xlu1 %v178_v4, %s1880_s18 }
  0x25   : > { %821 = vrot.lane.b32.xlu0 %v1926_v1, %s1884_s21  ;;  %823 = vrot.lane.b32.xlu1 %v1932_v3, %s1884_s21 }
  0x29   : > { %819 = vrot.lane.b32.xlu0 %v1928_v2, %s1884_s21  ;;  %497 = vrot.lane.b32.xlu1 %v178_v4, %s1881_s19 }
  0x2d   : > { %985 = vrot.lane.b32.xlu0 %v1926_v1, %s1885_s22  ;;  %987 = vrot.lane.b32.xlu1 %v1932_v3, %s1885_s22 }
  0x31   : > { %983 = vrot.lane.b32.xlu0 %v1928_v2, %s1885_s22  ;;  %661 = vrot.lane.b32.xlu1 %v178_v4, %s1883_s20 }
  0x35   : > { %825 = vrot.lane.b32.xlu0 %v178_v4, %s1884_s21  ;;  %1149 = vrot.lane.b32.xlu1 %v1926_v1, %s1886_s23  ;;  %s1838_s21 = smul.u32 24, %s2071_s13 }
  0x39   : > { %1151 = vrot.lane.b32.xlu0 %v1932_v3, %s1886_s23  ;;  %1147 = vrot.lane.b32.xlu1 %v1928_v2, %s1886_s23 }
  0x3d   : > { %989 = vrot.lane.b32.xlu0 %v178_v4, %s1885_s22  ;;  %1153 = vrot.lane.b32.xlu1 %v178_v4, %s1886_s23 }
  0x41   : > { %1313 = vrot.lane.b32.xlu0 %v1926_v1, %s1887_s24  ;;  %1315 = vrot.lane.b32.xlu1 %v1932_v3, %s1887_s24 }
  0x45   : > { %1311 = vrot.lane.b32.xlu0 %v1928_v2, %s1887_s24  ;;  %1317 = vrot.lane.b32.xlu1 %v178_v4, %s1887_s24  ;;  %s170_s24 = scalar_lea.vmem %s2069_s3, %s1838_s21 }
  0x49   : > { %1477 = vrot.lane.b32.xlu0 %v1926_v1, %s1888_s25  ;;  %1479 = vrot.lane.b32.xlu1 %v1932_v3, %s1888_s25 }
  0x4d   : > { %1481 = vrot.lane.b32.xlu0 %v178_v4, %s1888_s25  ;;  %1475 = vrot.lane.b32.xlu1 %v1928_v2, %s1888_s25 }
  0x51   : > { %1640 = vperm.xlu0 %1858, %v1637_v6   ;;  %v1753_v6 = vld [vmem:[%s2067_s1 + $0x40] sm:$0xff] }
  0x83   : > { %v188_v7 = vpop.permute.xlu0 %187  ;;  %v186_v8 = vpop.permute.xlu1 %185 }
  0x84   : > { %v194_v13 = vsel %vm193_vm1, %v186_v8, %v188_v7 }
  0x87   : > { %v190_v9 = vpop.permute.xlu0 %189  ;;  %v494_v10 = vpop.permute.xlu1 %493 }
  0x88   : > { %v195_v11 = vsel %vm193_vm1, %v188_v7, %v190_v9 }
  0x89   : > { %204 = vmatprep.subr.mxu0 %v195_v11 }
  0x8a   : > { %205 = vmatpush1.msra.mxu0 %v194_v13 }
  0x8b   : > { %v496_v14 = vpop.permute.xlu0 %495  ;;  %1731 = vmatmul.mubr.msk.f32.vlgmr.msra.gmra.mrb[0].mxu0 %vm200_vm2, %v1730_v12  ;;  %v492_v15 = vpop.permute.xlu1 %491  ;;  %348 = vmatprep.subr.mxu0 %v1926_v1 }
  0x8c   : > { %349 = vmatpush1.msra.mxu0 %v1928_v2  ;;  %v501_v16 = vsel %vm499_vm3, %v494_v10, %v496_v14  ;;  %412 = vmatprep.mubr.f32.mxu0 %v1879_v0  ;;  %v500_v20 = vsel %vm499_vm3, %v492_v15, %v494_v10 }
  0x8d   : > { %509 = vmatprep.subr.mxu0 %v501_v16 }
  0x8f   : > { %v658_v17 = vpop.permute.xlu0 %657  ;;  %v660_v18 = vpop.permute.xlu1 %659 }
  0x90   : > { %v665_v21 = vsel %vm663_vm4, %v658_v17, %v660_v18 }
  0x93   : > { %v656_v22 = vpop.permute.xlu0 %655  ;;  %v192_v23 = vpop.permute.xlu1 %191  ;;  %1733 = vmatmul.mubr.msk.f32.vlgmr.msra.gmra.mrb[0].mxu0 %vm200_vm2, %v174_v19 }
  0x94   : > { %510 = vmatpush1.msra.mxu0 %v500_v20  ;;  %v196_v24 = vsel %vm193_vm1, %v190_v9, %v192_v23  ;;  %573 = vmatprep.mubr.f32.mxu0 %v1879_v0  ;;  %v664_v29 = vsel %vm663_vm4, %v656_v22, %v658_v17 }
  0x95   : > { %673 = vmatprep.subr.mxu0 %v665_v21  ;;  %1778 = vmatpush3.msra.mxu1 %v196_v24 }
  0x96   : > { %1780 = vmatmul.mubr.msk.f32.vlgmr.msra.gmra.mrb[0].mxu1 %vm200_vm2, %v1730_v12  ;;  %1782 = vmatprep.subr.mxu1 %v1879_v0 }
  0x97   : > { %v822_v25 = vpop.permute.xlu0 %821  ;;  %v824_v26 = vpop.permute.xlu1 %823  ;;  %1783 = vmatpush3.msra.mxu1 %v1932_v3  ;;  %1784 = vmatprep.mubr.msk.f32.mxu1 %vm1882_vm0, %v1879_v0 }
  0x98   : > { %1787 = vmatprep.subr.mxu1 %v1879_v0  ;;  %v829_v28 = vsel %vm827_vm5, %v822_v25, %v824_v26 }
  0x9a   : > { %1785 = vmatmul.mubr.msk.f32.vlgmr.msra.gmra.mrb[2].mxu1 %vm200_vm2, %v174_v19 }
  0x9b   : > { %v820_v30 = vpop.permute.xlu0 %819  ;;  %v498_v31 = vpop.permute.xlu1 %497  ;;  %1736 = vmatmul.mubr.msk.f32.vlgmr.msra.gmra.mrb[0].mxu0 %vm200_vm2, %v1735_v27  ;;  %1789 = vmatprep.mubr.msk.f32.mxu1 %vm1882_vm0, %v1879_v0 }
  0x9c   : > { %v502_v32 = vsel %vm499_vm3, %v496_v14, %v498_v31  ;;  %674 = vmatpush1.msra.mxu0 %v664_v29  ;;  %737 = vmatprep.mubr.f32.mxu0 %v1879_v0  ;;  %v828_v37 = vsel %vm827_vm5, %v820_v30, %v822_v25 }
  0x9d   : > { %837 = vmatprep.subr.mxu0 %v829_v28  ;;  %1788 = vmatpush3.msra.mxu1 %v502_v32 }
  0x9e   : > { %1792 = vmatprep.subr.mxu1 %v1879_v0  ;;  %1790 = vmatmul.mubr.msk.f32.vlgmr.msra.gmra.mrb[4].mxu1 %vm200_vm2, %v1735_v27 }
  0x9f   : > { %v986_v33 = vpop.permute.xlu0 %985  ;;  %v988_v34 = vpop.permute.xlu1 %987  ;;  %1794 = vmatprep.mubr.msk.f32.mxu1 %vm1882_vm0, %v1879_v0 }
  0xa0   : > { %v993_v36 = vsel %vm991_vm6, %v986_v33, %v988_v34 }
  0xa3   : > { %v984_v38 = vpop.permute.xlu0 %983  ;;  %v662_v39 = vpop.permute.xlu1 %661  ;;  %1739 = vmatmul.mubr.msk.f32.vlgmr.msra.gmra.mrb[0].mxu0 %vm200_vm2, %v1738_v35 }
  0xa4   : > { %v666_v40 = vsel %vm663_vm4, %v660_v18, %v662_v39  ;;  %838 = vmatpush1.msra.mxu0 %v828_v37  ;;  %901 = vmatprep.mubr.f32.mxu0 %v1879_v0  ;;  %v992_v45 = vsel %vm991_vm6, %v984_v38, %v986_v33 }
  0xa5   : > { %1001 = vmatprep.subr.mxu0 %v993_v36  ;;  %1793 = vmatpush3.msra.mxu1 %v666_v40 }
  0xa6   : > { %1797 = vmatprep.subr.mxu1 %v1879_v0  ;;  %1795 = vmatmul.mubr.msk.f32.vlgmr.msra.gmra.mrb[6].mxu1 %vm200_vm2, %v1738_v35 }
  0xa7   : > { %v826_v41 = vpop.permute.xlu0 %825  ;;  %v1150_v42 = vpop.permute.xlu1 %1149  ;;  %1799 = vmatprep.mubr.msk.f32.mxu1 %vm1882_vm0, %v1879_v0 }
  0xa8   : > { %v830_v43 = vsel %vm827_vm5, %v824_v26, %v826_v41 }
  0xa9   : > { %1798 = vmatpush3.msra.mxu1 %v830_v43 }
  0xaa   : > { %1800 = vmatmul.mubr.msk.f32.vlgmr.msra.gmra.mrb[8].mxu1 %vm200_vm2, %v1741_v44  ;;  %1802 = vmatprep.subr.mxu1 %v1879_v0 }
  0xab   : > { %v1152_v46 = vpop.permute.xlu0 %1151  ;;  %v1148_v47 = vpop.permute.xlu1 %1147  ;;  %1742 = vmatmul.mubr.msk.f32.vlgmr.msra.gmra.mrb[0].mxu0 %vm200_vm2, %v1741_v44  ;;  %1804 = vmatprep.mubr.msk.f32.mxu1 %vm1882_vm0, %v1879_v0 }
  0xac   : > { %1002 = vmatpush1.msra.mxu0 %v992_v45  ;;  %v1157_v48 = vsel %vm1155_vm7, %v1150_v42, %v1152_v46  ;;  %1065 = vmatprep.mubr.f32.mxu0 %v1879_v0  ;;  %v1156_v54 = vsel %vm1155_vm7, %v1148_v47, %v1150_v42 }
  0xad   : > { %1165 = vmatprep.subr.mxu0 %v1157_v48 }
  0xaf   : > { %v990_v49 = vpop.permute.xlu0 %989  ;;  %v1154_v50 = vpop.permute.xlu1 %1153 }
  0xb0   : > { %v994_v52 = vsel %vm991_vm6, %v988_v34, %v990_v49  ;;  %v1158_v53 = vsel %vm1155_vm7, %v1152_v46, %v1154_v50 }
  0xb1   : > { %1803 = vmatpush3.msra.mxu1 %v994_v52 }
  0xb2   : > { %1805 = vmatmul.mubr.msk.f32.vlgmr.msra.gmra.mrb[10].mxu1 %vm200_vm2, %v1744_v51  ;;  %1807 = vmatprep.subr.mxu1 %v1879_v0 }
  0xb3   : > { %v1314_v55 = vpop.permute.xlu0 %1313  ;;  %v1316_v56 = vpop.permute.xlu1 %1315  ;;  %1745 = vmatmul.mubr.msk.f32.vlgmr.msra.gmra.mrb[0].mxu0 %vm200_vm2, %v1744_v51  ;;  %1808 = vmatpush3.msra.mxu1 %v1158_v53 }
  0xb4   : > { %1166 = vmatpush1.msra.mxu0 %v1156_v54  ;;  %1809 = vmatprep.mubr.msk.f32.mxu1 %vm1882_vm0, %v1879_v0  ;;  %v1321_v58 = vsel %vm1319_vm8, %v1314_v55, %v1316_v56 }
  0xb5   : > { %1329 = vmatprep.subr.mxu0 %v1321_v58  ;;  %1812 = vmatprep.subr.mxu1 %v1879_v0 }
  0xb6   : > { %1810 = vmatmul.mubr.msk.f32.vlgmr.msra.gmra.mrb[12].mxu1 %vm200_vm2, %v1747_v57  ;;  %1229 = vmatprep.mubr.f32.mxu0 %v1879_v0 }
  0xb7   : > { %v1312_v59 = vpop.permute.xlu0 %1311  ;;  %v1318_v60 = vpop.permute.xlu1 %1317  ;;  %1814 = vmatprep.mubr.msk.f32.mxu1 %vm1882_vm0, %v1879_v0 }
  0xb8   : > { %v1322_v62 = vsel %vm1319_vm8, %v1316_v56, %v1318_v60  ;;  %v1320_v63 = vsel %vm1319_vm8, %v1312_v59, %v1314_v55 }
  0xb9   : > { %1813 = vmatpush3.msra.mxu1 %v1322_v62 }
  0xba   : > { %1815 = vmatmul.mubr.msk.f32.vlgmr.msra.gmra.mrb[14].mxu1 %vm200_vm2, %v1750_v61  ;;  %1817 = vmatprep.subr.mxu1 %v1879_v0 }
  0xbb   : > { %v1478_v1 = vpop.permute.xlu0 %1477  ;;  %1748 = vmatmul.mubr.msk.f32.vlgmr.msra.gmra.mrb[0].mxu0 %vm200_vm2, %v1747_v57  ;;  %v1480_v2 = vpop.permute.xlu1 %1479  ;;  %1819 = vmatprep.mubr.msk.f32.mxu1 %vm1882_vm0, %v1879_v0 }
  0xbc   : > { %1330 = vmatpush1.msra.mxu0 %v1320_v63  ;;  %v1485_v3 = vsel %vm1483_vm9, %v1478_v1, %v1480_v2  ;;  %1393 = vmatprep.mubr.f32.mxu0 %v1879_v0 }
  0xbd   : > { %1493 = vmatprep.subr.mxu0 %v1485_v3 }
  0xbf   : > { %v1482_v4 = vpop.permute.xlu0 %1481  ;;  %v1476_v5 = vpop.permute.xlu1 %1475 }
  0xc0   : > { %v1486_v7 = vsel %vm1483_vm9, %v1480_v2, %v1482_v4  ;;  %v1484_v8 = vsel %vm1483_vm9, %v1476_v5, %v1478_v1 }
  0xc1   : > { %1818 = vmatpush3.msra.mxu1 %v1486_v7 }
  0xc2   : > { %1820 = vmatmul.mubr.msk.f32.vlgmr.msra.gmra.mrb[16].mxu1 %vm200_vm2, %v1753_v6 }
  0xc3   : > { %1751 = vmatmul.mubr.msk.f32.vlgmr.msra.gmra.mrb[0].mxu0 %vm200_vm2, %v1750_v61 }
  0xc4   : > { %1494 = vmatpush1.msra.mxu0 %v1484_v8  ;;  %1557 = vmatprep.mubr.f32.mxu0 %v1879_v0 }
  0xcb   : > { %1754 = vmatmul.mubr.msk.f32.vlgmr.msra.gmra.mrb[0].mxu0 %vm200_vm2, %v1753_v6 }
  0xd0   : > { %v1641_v32 = vpop.permute.xlu0 %1640 }
 0x169   : > { %v341_v9 = vpop.f32.mrb[0].mxu1 }
 0x16a   : > { %v1781_v10 = vpop.f32.mrb[1].mxu1 }
 0x16d   : > { %v485_v11 = vpop.f32.mrb[2].mxu1 }
 0x16e   : > { %v486_v12 = vadd.f32 %v485_v11, %v341_v9  ;;  %v1786_v13 = vpop.f32.mrb[3].mxu1 }
 0x171   : > { %v646_v14 = vpop.f32.mrb[4].mxu1 }
 0x172   : > { %v652_v15 = vadd.f32 %v646_v14, %v486_v12  ;;  %v1791_v16 = vpop.f32.mrb[5].mxu1 }
 0x179   : > { %v810_v17 = vpop.f32.mrb[6].mxu1 }
 0x17a   : > { %v816_v18 = vadd.f32 %v810_v17, %v652_v15  ;;  %v1796_v19 = vpop.f32.mrb[7].mxu1 }
 0x17d   : > { %v974_v20 = vpop.f32.mrb[8].mxu1 }
 0x17e   : > { %v980_v21 = vadd.f32 %v974_v20, %v816_v18  ;;  %v1801_v22 = vpop.f32.mrb[9].mxu1 }
 0x185   : > { %v1138_v23 = vpop.f32.mrb[10].mxu1 }
 0x186   : > { %v1144_v24 = vadd.f32 %v1138_v23, %v980_v21  ;;  %v1806_v25 = vpop.f32.mrb[11].mxu1 }
 0x189   : > { %v1302_v0 = vpop.f32.mrb[12].mxu1 }
 0x18a   : > { %v1308_v26 = vadd.f32 %v1302_v0, %v1144_v24  ;;  %v1811_v27 = vpop.f32.mrb[13].mxu1 }
 0x18d   : > { %v1466_v28 = vpop.f32.mrb[14].mxu1 }
 0x18e   : > { %v1472_v29 = vadd.f32 %v1466_v28, %v1308_v26  ;;  %v1816_v30 = vpop.f32.mrb[15].mxu1 }
 0x195   : > { %v1630_v31 = vpop.f32.mrb[16].mxu1 }
 0x196   : > { %v1636_v33 = vadd.f32 %v1630_v31, %v1472_v29  ;;  %v1821_v34 = vpop.f32.mrb[17].mxu1 }
 0x198   : > { %v1645_v35 = vadd.f32 %v1641_v32, %v1636_v33 }
 0x19a   : > { %v1648_v36 = vsub.f32 0.0, %v1645_v35 }
 0x19c   : > { %v1653_v37 = vmul.f32 1.442695, %v1648_v36 }
 0x19e   : > { %1859 = vpow2.f32 %v1653_v37  ;;  %v1559_v38 = vpop.f32.mrb[0].mxu0 }
 0x19f   : > { %v1643_v39 = vadd.f32 %v1641_v32, %v1559_v38  ;;  %v1561_v40 = vpop.f32.mrb[1].mxu0 }
 0x1a0   : > { %v1644_v41 = vadd.f32 %v1641_v32, %v1561_v40 }
 0x1a1   : > { %v1646_v42 = vsub.f32 0.0, %v1643_v39 }
 0x1a2   : > { %v1647_v43 = vsub.f32 0.0, %v1644_v41 }
 0x1a3   : > { %v1649_v44 = vmul.f32 1.442695, %v1646_v42 }
 0x1a4   : > { %v1651_v45 = vmul.f32 1.442695, %v1647_v43 }
 0x1a5   : > { %1861 = vpow2.f32 %v1649_v44 }
 0x1a6   : > { %1863 = vpow2.f32 %v1651_v45 }
 0x1a8   : > { %v1860_v46 = vpop.eup %1859 }
 0x1a9   : > { %v1657_v47 = vadd.f32 1.0, %v1860_v46 }
 0x1ab   : > { %1865 = vrcp.f32 %v1657_v47 }
 0x1af   : > { %v1862_v48 = vpop.eup %1861 }
 0x1b0   : > { %v1864_v49 = vpop.eup %1863  ;;  %v1655_v50 = vadd.f32 1.0, %v1862_v48 }
 0x1b1   : > { %v1656_v51 = vadd.f32 1.0, %v1864_v49 }
 0x1b2   : > { %1867 = vrcp.f32 %v1655_v50 }
 0x1b3   : > { %1869 = vrcp.f32 %v1656_v51 }
 0x1b5   : > { %v1866_v52 = vpop.eup %1865 }
 0x1b6   : > { %v1663_v53 = vmul.f32 %v1866_v52, %v1645_v35 }
 0x1b8   : > { %1666 = vst [vmem:[%s170_s24 + $0x10] sm:$0xff] %v1663_v53 }
 0x1bc   : > { %v1868_v54 = vpop.eup %1867 }
 0x1bd   : > { %v1870_v55 = vpop.eup %1869  ;;  %v1661_v56 = vmul.f32 %v1868_v54, %v1643_v39 }
 0x1be   : > { %v1662_v57 = vmul.f32 %v1870_v55, %v1644_v41 }
 0x1bf   : > { %1664 = vst [vmem:[%s170_s24] sm:$0xff] %v1661_v56 }
 0x1c0   : > { %1665 = vst [vmem:[%s170_s24 + $0x8] sm:$0xff] %v1662_v57 }
 0x1c1 PF: > { %s13_s12 = sadd.s32 1, %s1877_s12  }
 0x1c2   : > { %p10_p4 = scmp.ge.s32.totalorder %s13_s12, 4  }
 0x1c4   :  { %12 = sbr.rel (!%p10_p4) target bundleno = 1 (0x1), region = 70 }

</bundles_post_ra>
